<compile_context>
chip_gen: v7x
topology: tpu7x:2x2x1
jax: 0.10.0
libtpu: 0.0.40
codegen_flags: <defaults>
</compile_context>

<pallas_src>
import numpy as np
import jax
import jax.numpy as jnp
from jax.experimental import pallas as pl
from jax.experimental.pallas import tpu as pltpu


def _build_pos_enc(seq_len: int, d_model: int, dtype=jnp.float32) -> jnp.ndarray:
    """Sinusoidal positional encoding, shape (seq_len, d_model). Matches the PyTorch init."""
    assert d_model % 2 == 0, "PosEncoder interleave assumes an even d_model"
    position = jnp.arange(seq_len, dtype=jnp.float32)[:, None]                 # (S, 1)
    div_term = jnp.exp(
        jnp.arange(0, d_model, 2, dtype=jnp.float32) * (-np.log(10000.0) / d_model)
    )                                                                          # (D//2,)
    ang = position * div_term                                                  # (S, D//2)
    # interleave: even cols = sin, odd cols = cos (matches the PyTorch 0::2 / 1::2 init)
    pe = jnp.stack([jnp.sin(ang), jnp.cos(ang)], axis=-1)                      # (S, D//2, 2)
    return pe.reshape(seq_len, d_model).astype(dtype)                          # (S, D)


def _pos_encoder_kernel(x_ref, pe_ref, o_ref):
    # x_ref / o_ref: (tile_b, tile_c); pe_ref: (1, tile_c) -> cheap sublane-broadcast add.
    o_ref[...] = x_ref[...] + pe_ref[...]


def _vmem_budget_and_limit():
    """(working-set budget for tiles, vmem_limit_bytes) tuned to the local TPU generation."""
    cap = None
    try:
        cap = getattr(pltpu.get_tpu_info(), "vmem_capacity_bytes", None)
    except Exception:
        cap = None
    if not cap:
        # Conservative fallback: fits v5e's scoped default area with an explicit 32 MiB cap.
        return 16 * 1024 * 1024, 32 * 1024 * 1024
    # v7x (64 MiB/TC): 32 MiB working set under a 48 MiB cap; v5e/v6e (128 MiB): 32 / 64 MiB.
    budget = min(cap // 2, 32 * 1024 * 1024)
    limit = min((cap * 3) // 4, 64 * 1024 * 1024)
    return budget, limit


_LANE_CAP = 16 * 1024    # max lane (column) tile width
_ROW_CAP = 256           # max sublane (row) tile height


def _choose_tiles(Bp: int, Cp: int, dtype_bytes: int, budget_bytes: int):
    """Pick (tile_b, tile_c) for the flattened/padded (Bp, Cp) problem.

    VMEM working set counted (all double-buffered): x tile + out tile (tile_b rows each)
    plus the pe tile, which is sublane-padded to the native tile (8 f32 / 16 bf16 rows).
    """
    sub = 8 * max(1, 4 // dtype_bytes)    # sublane granule: 8 f32 / 16 bf16 / 32 int8

    # ---- lane (last-dim) tile: widest 128-multiple <= cap that divides Cp; if that
    # divisor is pathologically narrow, take the cap and accept a 128-aligned tail block.
    c_blocks = Cp // 128
    cap_blocks = max(1, min(c_blocks, _LANE_CAP // 128))
    tile_c_blocks = cap_blocks
    for t in range(cap_blocks, 0, -1):
        if c_blocks % t == 0:
            tile_c_blocks = t
            break
    if tile_c_blocks * 128 < 4096 and c_blocks > cap_blocks:
        tile_c_blocks = cap_blocks
    tile_c = tile_c_blocks * 128

    # ---- sublane (row) tile
    if Bp % sub == 0:
        per_row = 2 * tile_c * dtype_bytes                      # double-buffered bytes/row
        rows_budget = budget_bytes // per_row                   # rows for x + out + padded pe
        tile_b_max = max(sub, ((rows_budget - sub) // 2) // sub * sub)
        tile_b = min(Bp, _ROW_CAP, tile_b_max)
    else:
        # Only reached for small, misaligned B (wrapper pads large misaligned B):
        # full-extent row block is always legal; shrink tile_c if the budget demands it.
        tile_b = Bp
        while 2 * tile_c * dtype_bytes * (2 * tile_b + sub) > budget_bytes and tile_c > 128:
            tile_c = max(128, (tile_c // 2) // 128 * 128)

    # ---- prefer >=4 blocks (>=2 per TensorCore on dual-TC parts) for big inputs
    total_bytes = Bp * Cp * dtype_bytes
    if total_bytes >= (8 << 20):
        while pl.cdiv(Bp, tile_b) * pl.cdiv(Cp, tile_c) < 4:
            if Bp % sub == 0 and tile_b >= 2 * sub:
                tile_b = max(sub, (tile_b // 2) // sub * sub)
            elif tile_c >= 256:
                tile_c = max(128, (tile_c // 2) // 128 * 128)
            else:
                break
    return tile_b, tile_c


def pos_encoder(x: jnp.ndarray, pos_enc: jnp.ndarray, *, donate_into_x: bool = False):
    """x: (B, S, D); pos_enc: (S, D) -> x + pos_enc[None], in x's dtype."""
    B, S, D = x.shape
    assert pos_enc.shape == (S, D)
    C = S * D
    dtype = x.dtype
    dtype_bytes = jnp.dtype(dtype).itemsize
    sub = 8 * max(1, 4 // dtype_bytes)

    budget, vmem_limit = _vmem_budget_and_limit()

    # Lane-dense 2D slab; pad columns to a multiple of 128 and (only when large AND
    # misaligned) rows to the sublane granule, so tiling + unmasked lane-dense stores
    # always apply instead of falling back to oversized full-extent blocks.
    Cp = ((C + 127) // 128) * 128
    Bp = ((B + sub - 1) // sub) * sub if (B % sub != 0 and B > 4 * sub) else B
    pad_b, pad_c = Bp - B, Cp - C

    # NOTE: pe is cast to x.dtype (as a PyTorch buffer in model dtype would be); callers
    # keeping pe in f32 for bf16 x get slightly different rounding than f32-add-then-cast.
    # For hot loops, cache pos_enc pre-cast/pre-flattened outside this wrapper.
    x2 = x.reshape(B, C)
    pe2 = pos_enc.astype(dtype).reshape(1, C)
    if pad_b or pad_c:
        x2 = jnp.pad(x2, ((0, pad_b), (0, pad_c)))
        pe2 = jnp.pad(pe2, ((0, 0), (0, pad_c)))

    tile_b, tile_c = _choose_tiles(Bp, Cp, dtype_bytes, budget)
    # Row axis innermost (fastest): pe's block index is constant across consecutive steps,
    # so Pallas skips its re-DMA and the pe table is read from HBM exactly once.
    grid = (pl.cdiv(Cp, tile_c), pl.cdiv(Bp, tile_b))

    out2 = pl.pallas_call(
        _pos_encoder_kernel,
        out_shape=jax.ShapeDtypeStruct((Bp, Cp), dtype),
        grid_spec=pltpu.PrefetchScalarGridSpec(
            num_scalar_prefetch=0,
            grid=grid,
            in_specs=[
                pl.BlockSpec((tile_b, tile_c), lambda j, i: (i, j)),   # x tile
                pl.BlockSpec((1, tile_c), lambda j, i: (0, j)),        # pe slice, constant in i
            ],
            out_specs=pl.BlockSpec((tile_b, tile_c), lambda j, i: (i, j)),
        ),
        compiler_params=pltpu.CompilerParams(
            dimension_semantics=("parallel", "parallel"),
            vmem_limit_bytes=vmem_limit,
        ),
        # TODO(synk): best win is fusing this add into the adjacent embedding/projection
        # kernel; aliasing the output onto x removes the extra output allocation when the
        # caller can donate x (off by default to avoid forcing a defensive copy).
        input_output_aliases=({0: 0} if donate_into_x else {}),
    )(x2, pe2)

    if pad_b or pad_c:
        out2 = out2[:B, :C]
    return out2.reshape(B, S, D)


if __name__ == "__main__":
    B, S, D = 2, 8, 32  # batch, seq_len, d_model
    key = jax.random.PRNGKey(0)
    x = jax.random.normal(key, (B, S, D), dtype=jnp.float32)

    pe = _build_pos_enc(S, D, dtype=x.dtype)   # built once, already in x's dtype
    out = jax.block_until_ready(pos_encoder(x, pe))

    # reference check (plain JAX, mirrors the PyTorch forward)
    ref = x + pe[None, :, :]
    np.testing.assert_allclose(np.asarray(out), np.asarray(ref), rtol=1e-6, atol=1e-6)

    print("KERNEL_OK")
</pallas_src>

<mosaic_0001>
module attributes {stable_mosaic.version = 11 : i64} {
  func.func @_pos_encoder_kernel(%arg0: i32, %arg1: i32, %arg2: memref<2x256xf32, #tpu.memory_space<vmem>>, %arg3: memref<1x256xf32, #tpu.memory_space<vmem>>, %arg4: memref<2x256xf32, #tpu.memory_space<vmem>>) attributes {dimension_semantics = [#tpu.dimension_semantics<parallel>, #tpu.dimension_semantics<parallel>], iteration_bounds = array<i64: 1, 1>, scalar_prefetch = 0 : i64, scratch_operands = 0 : i64, tpu.core_type = #tpu.core_type<tc>, window_params = [{transform_indices = @transform_0, window_bounds = array<i64: 2, 256>}, {transform_indices = @transform_1, window_bounds = array<i64: 1, 256>}, {transform_indices = @transform_2, window_bounds = array<i64: 2, 256>}]} {
    %c0 = arith.constant 0 : index
    %c0_0 = arith.constant 0 : index
    %0 = vector.load %arg2[%c0, %c0_0] : memref<2x256xf32, #tpu.memory_space<vmem>>, vector<2x256xf32>
    %c0_1 = arith.constant 0 : index
    %c0_2 = arith.constant 0 : index
    %1 = vector.load %arg3[%c0_1, %c0_2] : memref<1x256xf32, #tpu.memory_space<vmem>>, vector<1x256xf32>
    %2 = vector.broadcast %1 : vector<1x256xf32> to vector<2x256xf32>
    %3 = arith.addf %0, %2 : vector<2x256xf32>
    %c0_3 = arith.constant 0 : index
    %c0_4 = arith.constant 0 : index
    %4 = vector.load %arg4[%c0_3, %c0_4] : memref<2x256xf32, #tpu.memory_space<vmem>>, vector<2x256xf32>
    tpu.vector_store %arg4[%c0_3, %c0_4], %3 {strides = array<i32>} : memref<2x256xf32, #tpu.memory_space<vmem>>, vector<2x256xf32>,
    return
  }
  func.func @transform_0(%arg0: i32, %arg1: i32) -> (i32, i32) {
    %c0_i32 = arith.constant 0 : i32
    return %arg1, %arg0 : i32, i32
  }
  func.func @transform_1(%arg0: i32, %arg1: i32) -> (i32, i32) {
    %c0_i32 = arith.constant 0 : i32
    %c0_i32_0 = arith.constant 0 : i32
    return %c0_i32, %arg0 : i32, i32
  }
  func.func @transform_2(%arg0: i32, %arg1: i32) -> (i32, i32) {
    %c0_i32 = arith.constant 0 : i32
    return %arg1, %arg0 : i32, i32
  }
}

</mosaic_0001>

<bundles_post_ra>
// kernel: tpu_custom_call.1
= control target key start
LH: loop header
LB: loop body
LE: loop exit
PB: predicated region body
PF: predicated region fallthrough
CT: control target
= control target key end

     0   :  { %7 = vsyncpa [#allocation3], 0  ;;  %s157_s0 = inlined_call_operand.hbm [shape: f32[2,256], index: 0, kind: input, shape index: {}]   ;;  %s158_s1 = inlined_call_operand.vmem [shape: f32[1,256], index: 1, kind: input, shape index: {}]   ;;  %s159_s2 = inlined_call_operand.hbm [shape: f32[2,256], index: 2, kind: output, shape index: {}]  }
   0x1   :  { %8 = vsyncpa [#allocation4], 0  ;;  %s112_s9 = smov [#allocation2]   ;;  %s64_s13 = scalar_lea.hbm %s157_s0, 64 }
   0x2   :  { %s15_s10 = sshll.u32 %s112_s9, 4  ;;  %p65_p0 = scmp.ne.s32.totalorder %s157_s0, %s64_s13  ;;  %s16_s10 = int_to_ptr.vmem [resolvable:$true] %s15_s10 }
   0x3   :  { %p68_p1 = scmp.lt.u32.totalorder %s64_s13, %s157_s0 }
   0x5   :  { %p70_p2 = pnand %p68_p1, %p65_p0 }
   0x7   :  { %73 = shalt.err (!%p70_p2)
}
   0x8   :  { %s74_s18 = scalar_lea.vmem %s16_s10, 64  ;;  %p79_p4 = scmp.lt.s32.totalorder %s16_s10, %s16_s10 }
   0x9   :  { %p75_p3 = scmp.ne.s32.totalorder %s16_s10, %s74_s18  ;;  %p80_p5 = scmp.lt.s32.totalorder %s74_s18, %s74_s18 }
   0xb   :  { %p81_p6 = por %p80_p5, %p79_p4 }
   0xd   :  { %p82_p7 = pnand %p81_p6, %p75_p3 }
   0xf   :  { %85 = shalt.err (!%p82_p7)
}
  0x10   :  { %18 = dma.hbm_to_vmem [thread:$0]  %s157_s0, 64, %s16_s10, [#allocation3]  }
  0x11   :  { %108 = dma.done.wait [#allocation3], 64  }
  0x12   :  { %109 = vsyncadd [#allocation3], 4294967232  ;;  %v27_v0 = vlaneseq  ;;  %v113_v1 = vmov 1983009808   ;;  %v25_v7 = vld [vmem:[%s158_s1] sm:$0x3] }
  0x13   :  { %v37_v2 = vunpack.c.l.s4 %v113_v1  ;;  %v24_v12 = vld [vmem:[#allocation2] sm:$0xf]  ;;  %s114_s23 = smov [#allocation5]  }
  0x14   :  { %v28_v3 = vshrl.u32 %v27_v0, 7  ;;  %s52_s0 = sshll.u32 %s114_s23, 4  ;;  %s53_s0 = int_to_ptr.vmem [resolvable:$true] %s52_s0 }
  0x15   :  { %v38_v6 = vunpack.c.0.s8 %v37_v2  ;;  %s86_s24 = scalar_lea.vmem %s53_s0, 64  ;;  %p91_p9 = scmp.lt.s32.totalorder %s53_s0, %s53_s0 }
  0x16   :  { %v29_v4 = vsub.s32 0, %v28_v3  ;;  %v33_v5 = vsub.s32 1, %v28_v3  ;;  %p87_p8 = scmp.ne.s32.totalorder %s53_s0, %s86_s24  ;;  %p92_p10 = scmp.lt.s32.totalorder %s86_s24, %s86_s24 }
  0x17   :  { %v41_v10 = vsub.s32 %v38_v6, %v28_v3 }
  0x18   :  { %v30_v8 = vrot.slane %v25_v7, %v29_v4  ;;  %v34_v9 = vrot.slane %v25_v7, %v33_v5  ;;  %p93_p11 = por %p92_p10, %p91_p9 }
  0x1a   :  { %v35_v11 = vcombine.low %v30_v8, %v34_v9  ;;  %p94_p12 = pnand %p93_p11, %p87_p8 }
  0x1c   :  { %v42_v13 = vrot.slane %v35_v11, %v41_v10 }
  0x1e   :  { %v44_v14 = vadd.f32 %v42_v13, %v24_v12 }
  0x20   :  { %45 = vst [vmem:[#allocation5] sm:$0xf] %v44_v14 }
  0x21   :  { %97 = shalt.err (!%p94_p12)
}
  0x22   :  { %s98_s26 = scalar_lea.hbm %s159_s2, 64 }
  0x23   :  { %p99_p13 = scmp.ne.s32.totalorder %s159_s2, %s98_s26  ;;  %p102_p0 = scmp.lt.u32.totalorder %s98_s26, %s159_s2 }
  0x25   :  { %p104_p1 = pnand %p102_p0, %p99_p13 }
  0x27   :  { %107 = shalt.err (!%p104_p1)
}
  0x28   :  { %55 = dma.vmem_to_hbm [thread:$0]  %s53_s0, 64, %s159_s2, [#allocation4]  }
  0x29   :  { %110 = dma.done.wait [#allocation4], 64  }
  0x2a   :  { %111 = vsyncadd [#allocation4], 4294967232 }
  0x2b   :  { %59 = vsyncpa [#allocation3], 1 }
  0x2c   :  { %60 = vsyncpa [#allocation4], 1 }

</bundles_post_ra>
